<compile_context>
chip_gen: v6e
topology: v6e:2x2x1
jax: 0.10.0
libtpu: 0.0.40
codegen_flags: <defaults>
</compile_context>

<pallas_src>
import jax
import jax.numpy as jnp
from jax import lax
from jax.experimental import pallas as pl
from jax.experimental.pallas import tpu as pltpu

# ---------------- hyperparams (stand-ins for argparse values) ----------------
BLOCK_SIZE = 8                      # block_size (max sequence length, == T here)
N_EMBED    = 32                     # n_embed
NUM_HEAD   = 4
HEAD_SIZE  = N_EMBED // NUM_HEAD    # 8
DROPOUT    = 0.0                    # eval mode -> identity


# ---------------------------- fused MHA kernel --------------------------------
def _mha_fused_kernel(x_ref, wqkv_ref, wproj_ref, bproj_ref, o_ref):
    """Whole (B, T, C) in one step: QKV (all heads) + causal attn + fused proj."""
    x = x_ref[...]                                   # (B, T, C)
    B, T, C = x.shape
    hs = HEAD_SIZE

    # One lane-dense QKV matmul over ALL (batch, token) rows: (B*T, C) @ (C, 3C)
    x2 = x.reshape(B * T, C)
    qkv = jnp.dot(x2, wqkv_ref[...], preferred_element_type=jnp.float32)   # (B*T, 3C)
    qkv = qkv.reshape(B, T, 3 * C)                   # (B, T, 3C)

    # NOTE: PyTorch code scales by C (= n_embed), not head_size.
    scale = C ** (-0.5)

    # Causal additive mask, built once and broadcast over batch & heads.
    row = lax.broadcasted_iota(jnp.int32, (T, T), 0)
    col = lax.broadcasted_iota(jnp.int32, (T, T), 1)
    neg = jnp.where(col <= row, 0.0, -1e30).astype(jnp.float32)[None]      # (1, T, T)

    # Per-head attention (unrolled at trace time); projection accumulated per
    # head so head outputs are never concatenated along the lane axis.
    y = jnp.zeros((B, T, C), jnp.float32)
    for h in range(NUM_HEAD):
        q = qkv[:, :,         h * hs:          (h + 1) * hs]               # (B, T, hs)
        k = qkv[:, :, C +     h * hs: C +      (h + 1) * hs]
        v = qkv[:, :, 2 * C + h * hs: 2 * C +  (h + 1) * hs]

        # Head-dim contraction expressed directly (no k transpose).
        wei = jnp.einsum('btd,bsd->bts', q, k,
                         preferred_element_type=jnp.float32) * scale       # (B, T, T)
        wei = wei + neg

        # Numerically-stable softmax, exact division.
        m = jnp.max(wei, axis=-1, keepdims=True)
        e = jnp.exp(wei - m)
        p = e / jnp.sum(e, axis=-1, keepdims=True)

        out_h = jnp.einsum('bts,bsd->btd', p, v,
                           preferred_element_type=jnp.float32)              # (B, T, hs)

        # Fused output projection: static slice of w_proj, accumulated in f32.
        y = y + jnp.einsum('btd,dc->btc', out_h,
                           wproj_ref[h * hs:(h + 1) * hs, :],
                           preferred_element_type=jnp.float32)

    y = y + bproj_ref[...]                            # (1, C) broadcasts over (B, T, C)
    o_ref[...] = y.astype(o_ref.dtype)


def multi_head_attention_fused(x, w_qkv, w_proj, b_proj):
    """x: (B, T, C); w_qkv: (C, 3*C); w_proj: (C, C); b_proj: (1, C) -> (B, T, C)."""
    B, T, C = x.shape
    return pl.pallas_call(
        _mha_fused_kernel,
        out_shape=jax.ShapeDtypeStruct((B, T, C), x.dtype),
        grid_spec=pltpu.PrefetchScalarGridSpec(
            num_scalar_prefetch=0,
            grid=(1,),                                   # single step: all rows at once
            in_specs=[
                pl.BlockSpec((B, T, C),  lambda i: (0, 0, 0)),
                pl.BlockSpec((C, 3 * C), lambda i: (0, 0)),
                pl.BlockSpec((C, C),     lambda i: (0, 0)),
                pl.BlockSpec((1, C),     lambda i: (0, 0)),
            ],
            out_specs=pl.BlockSpec((B, T, C), lambda i: (0, 0, 0)),
        ),
        compiler_params=pltpu.CompilerParams(
            dimension_semantics=("arbitrary",)),
    )(x, w_qkv, w_proj, b_proj)


# ------------------------------- full module ---------------------------------
def _flatten_heads(w):
    """(H, C, hs) -> (C, H*hs) so that columns [h*hs:(h+1)*hs] == x @ w[h]."""
    H, C, hs = w.shape
    return jnp.transpose(w, (1, 0, 2)).reshape(C, H * hs)


def multi_head_attention(x, params):
    # Pack per-head Q/K/V weights into one (C, 3*H*hs) matrix (layout plumbing,
    # done once outside the kernel).
    w_qkv = jnp.concatenate(
        [_flatten_heads(params["wq"]),
         _flatten_heads(params["wk"]),
         _flatten_heads(params["wv"])], axis=-1)
    out = multi_head_attention_fused(x, w_qkv, params["w_proj"], params["b_proj"])
    # dropout (eval mode) == identity
    return out


def init_params(key):
    k1, k2, k3, k4, k5 = jax.random.split(key, 5)
    std = 0.02
    wq = std * jax.random.normal(k1, (NUM_HEAD, N_EMBED, HEAD_SIZE), jnp.float32)
    wk = std * jax.random.normal(k2, (NUM_HEAD, N_EMBED, HEAD_SIZE), jnp.float32)
    wv = std * jax.random.normal(k3, (NUM_HEAD, N_EMBED, HEAD_SIZE), jnp.float32)
    w_proj = std * jax.random.normal(k4, (N_EMBED, N_EMBED), jnp.float32)
    b_proj = std * jax.random.normal(k5, (1, N_EMBED), jnp.float32)
    return dict(wq=wq, wk=wk, wv=wv, w_proj=w_proj, b_proj=b_proj)


# ---------------------------- pure-JAX reference ------------------------------
def reference(x, p):
    B, T, C = x.shape
    outs = []
    for h in range(NUM_HEAD):
        q = x @ p["wq"][h]
        k = x @ p["wk"][h]
        v = x @ p["wv"][h]
        wei = (q @ jnp.swapaxes(k, -2, -1)) * (C ** -0.5)
        mask = jnp.tril(jnp.ones((T, T), bool))
        wei = jnp.where(mask, wei, -jnp.inf)
        wei = jax.nn.softmax(wei, axis=-1)
        outs.append(wei @ v)
    cat = jnp.concatenate(outs, axis=-1)
    return cat @ p["w_proj"] + p["b_proj"][0]


if __name__ == "__main__":
    key = jax.random.PRNGKey(0)
    kx, kp = jax.random.split(key)
    B, T = 2, BLOCK_SIZE
    x = jax.random.normal(kx, (B, T, N_EMBED), jnp.float32)
    params = init_params(kp)

    out = jax.block_until_ready(multi_head_attention(x, params))
    ref = reference(x, params)

    assert out.shape == (B, T, N_EMBED), out.shape
    assert jnp.allclose(out, ref, atol=1e-5, rtol=1e-5), \
        float(jnp.max(jnp.abs(out - ref)))
    print("KERNEL_OK")
</pallas_src>

<mosaic_0001>
module attributes {stable_mosaic.version = 11 : i64} {
  func.func @_mha_fused_kernel(%arg0: i32, %arg1: memref<2x8x32xf32, #tpu.memory_space<vmem>>, %arg2: memref<32x96xf32, #tpu.memory_space<vmem>>, %arg3: memref<32x32xf32, #tpu.memory_space<vmem>>, %arg4: memref<1x32xf32, #tpu.memory_space<vmem>>, %arg5: memref<2x8x32xf32, #tpu.memory_space<vmem>>) attributes {dimension_semantics = [#tpu.dimension_semantics<arbitrary>], iteration_bounds = array<i64: 1>, scalar_prefetch = 0 : i64, scratch_operands = 0 : i64, tpu.core_type = #tpu.core_type<tc>, window_params = [{pipeline_mode = #tpu.pipeline_mode<synchronous>, transform_indices = @transform_0, window_bounds = array<i64: 2, 8, 32>}, {pipeline_mode = #tpu.pipeline_mode<synchronous>, transform_indices = @transform_1, window_bounds = array<i64: 32, 96>}, {pipeline_mode = #tpu.pipeline_mode<synchronous>, transform_indices = @transform_2, window_bounds = array<i64: 32, 32>}, {pipeline_mode = #tpu.pipeline_mode<synchronous>, transform_indices = @transform_3, window_bounds = array<i64: 1, 32>}, {pipeline_mode = #tpu.pipeline_mode<synchronous>, transform_indices = @transform_4, window_bounds = array<i64: 2, 8, 32>}]} {
    %c0 = arith.constant 0 : index
    %c0_0 = arith.constant 0 : index
    %c0_1 = arith.constant 0 : index
    %0 = vector.load %arg1[%c0, %c0_0, %c0_1] : memref<2x8x32xf32, #tpu.memory_space<vmem>>, vector<2x8x32xf32>
    %1 = vector.shape_cast %0 : vector<2x8x32xf32> to vector<16x32xf32>
    %c0_2 = arith.constant 0 : index
    %c0_3 = arith.constant 0 : index
    %2 = vector.load %arg2[%c0_2, %c0_3] : memref<32x96xf32, #tpu.memory_space<vmem>>, vector<32x96xf32>
    %cst = arith.constant dense<0.000000e+00> : vector<16x96xf32>
    %3 = tpu.matmul %1, %2, %cst {dimension_numbers = #tpu.dot_dimension_numbers<[1], [0], [0], [1], [0, 0, 1, 1], [], []>} : vector<16x32xf32>, vector<32x96xf32>, vector<16x96xf32> -> vector<16x96xf32>
    %4 = vector.shape_cast %3 : vector<16x96xf32> to vector<2x8x96xf32>
    %5 = tpu.iota {dimensions = array<i32: 0>} : vector<8x8xi32>
    %6 = tpu.iota {dimensions = array<i32: 1>} : vector<8x8xi32>
    %7 = arith.cmpi sle, %6, %5 : vector<8x8xi32>
    %cst_4 = arith.constant 0.000000e+00 : f32
    %cst_5 = arith.constant -1.000000e+30 : f32
    %8 = vector.broadcast %cst_4 : f32 to vector<8x8xf32>
    %9 = vector.broadcast %cst_5 : f32 to vector<8x8xf32>
    %10 = arith.select %7, %8, %9 : vector<8x8xi1>, vector<8x8xf32>
    %11 = vector.shape_cast %10 : vector<8x8xf32> to vector<1x8x8xf32>
    %cst_6 = arith.constant 0.000000e+00 : f32
    %12 = vector.broadcast %cst_6 : f32 to vector<2x8x32xf32>
    %13 = vector.extract_strided_slice %4 {offsets = [0, 0, 0], sizes = [2, 8, 8], strides = [1, 1, 1]} : vector<2x8x96xf32> to vector<2x8x8xf32>
    %14 = vector.extract_strided_slice %4 {offsets = [0, 0, 32], sizes = [2, 8, 8], strides = [1, 1, 1]} : vector<2x8x96xf32> to vector<2x8x8xf32>
    %15 = vector.extract_strided_slice %4 {offsets = [0, 0, 64], sizes = [2, 8, 8], strides = [1, 1, 1]} : vector<2x8x96xf32> to vector<2x8x8xf32>
    "tpu.trace_start"() <{level = 10 : i32, message = "btd,bsd->bts"}> : () -> ()
    %cst_7 = arith.constant dense<0.000000e+00> : vector<2x8x8xf32>
    %16 = tpu.matmul %13, %14, %cst_7 {dimension_numbers = #tpu.dot_dimension_numbers<[2], [2], [1], [1], [0, 0, 0, 1, 1, 1], [0], [0]>} : vector<2x8x8xf32>, vector<2x8x8xf32>, vector<2x8x8xf32> -> vector<2x8x8xf32>
    "tpu.trace_stop"() : () -> ()
    %cst_8 = arith.constant 0.176776692 : f32
    %17 = vector.broadcast %cst_8 : f32 to vector<2x8x8xf32>
    %18 = arith.mulf %16, %17 : vector<2x8x8xf32>
    %19 = vector.broadcast %11 : vector<1x8x8xf32> to vector<2x8x8xf32>
    %20 = arith.addf %18, %19 : vector<2x8x8xf32>
    %cst_9 = arith.constant dense<0xFF800000> : vector<2x8xf32>
    %21 = vector.multi_reduction <maximumf>, %20, %cst_9 [2] : vector<2x8x8xf32> to vector<2x8xf32>
    %22 = vector.shape_cast %21 : vector<2x8xf32> to vector<2x8x1xf32>
    %23 = vector.broadcast %22 : vector<2x8x1xf32> to vector<2x8x8xf32>
    %24 = arith.subf %20, %23 : vector<2x8x8xf32>
    %25 = math.exp %24 : vector<2x8x8xf32>
    %cst_10 = arith.constant dense<0.000000e+00> : vector<2x8xf32>
    %26 = vector.multi_reduction <add>, %25, %cst_10 [2] : vector<2x8x8xf32> to vector<2x8xf32>
    %27 = vector.shape_cast %26 : vector<2x8xf32> to vector<2x8x1xf32>
    %28 = vector.broadcast %27 : vector<2x8x1xf32> to vector<2x8x8xf32>
    %29 = arith.divf %25, %28 : vector<2x8x8xf32>
    "tpu.trace_start"() <{level = 10 : i32, message = "bts,bsd->btd"}> : () -> ()
    %cst_11 = arith.constant dense<0.000000e+00> : vector<2x8x8xf32>
    %30 = tpu.matmul %29, %15, %cst_11 {dimension_numbers = #tpu.dot_dimension_numbers<[2], [1], [1], [2], [0, 0, 0, 1, 1, 2], [0], [0]>} : vector<2x8x8xf32>, vector<2x8x8xf32>, vector<2x8x8xf32> -> vector<2x8x8xf32>
    "tpu.trace_stop"() : () -> ()
    %c0_12 = arith.constant 0 : index
    %c0_13 = arith.constant 0 : index
    %31 = vector.load %arg3[%c0_12, %c0_13] : memref<32x32xf32, #tpu.memory_space<vmem>>, vector<8x32xf32>
    "tpu.trace_start"() <{level = 10 : i32, message = "btd,dc->btc"}> : () -> ()
    %cst_14 = arith.constant dense<0.000000e+00> : vector<2x8x32xf32>
    %32 = tpu.matmul %30, %31, %cst_14 {dimension_numbers = #tpu.dot_dimension_numbers<[2], [0], [0, 1], [1], [0, 0, 0, 1, 1, 1], [], []>} : vector<2x8x8xf32>, vector<8x32xf32>, vector<2x8x32xf32> -> vector<2x8x32xf32>
    "tpu.trace_stop"() : () -> ()
    %33 = arith.addf %12, %32 : vector<2x8x32xf32>
    %34 = vector.extract_strided_slice %4 {offsets = [0, 0, 8], sizes = [2, 8, 8], strides = [1, 1, 1]} : vector<2x8x96xf32> to vector<2x8x8xf32>
    %35 = vector.extract_strided_slice %4 {offsets = [0, 0, 40], sizes = [2, 8, 8], strides = [1, 1, 1]} : vector<2x8x96xf32> to vector<2x8x8xf32>
    %36 = vector.extract_strided_slice %4 {offsets = [0, 0, 72], sizes = [2, 8, 8], strides = [1, 1, 1]} : vector<2x8x96xf32> to vector<2x8x8xf32>
    "tpu.trace_start"() <{level = 10 : i32, message = "btd,bsd->bts"}> : () -> ()
    %cst_15 = arith.constant dense<0.000000e+00> : vector<2x8x8xf32>
    %37 = tpu.matmul %34, %35, %cst_15 {dimension_numbers = #tpu.dot_dimension_numbers<[2], [2], [1], [1], [0, 0, 0, 1, 1, 1], [0], [0]>} : vector<2x8x8xf32>, vector<2x8x8xf32>, vector<2x8x8xf32> -> vector<2x8x8xf32>
    "tpu.trace_stop"() : () -> ()
    %cst_16 = arith.constant 0.176776692 : f32
    %38 = vector.broadcast %cst_16 : f32 to vector<2x8x8xf32>
    %39 = arith.mulf %37, %38 : vector<2x8x8xf32>
    %40 = vector.broadcast %11 : vector<1x8x8xf32> to vector<2x8x8xf32>
    %41 = arith.addf %39, %40 : vector<2x8x8xf32>
    %cst_17 = arith.constant dense<0xFF800000> : vector<2x8xf32>
    %42 = vector.multi_reduction <maximumf>, %41, %cst_17 [2] : vector<2x8x8xf32> to vector<2x8xf32>
    %43 = vector.shape_cast %42 : vector<2x8xf32> to vector<2x8x1xf32>
    %44 = vector.broadcast %43 : vector<2x8x1xf32> to vector<2x8x8xf32>
    %45 = arith.subf %41, %44 : vector<2x8x8xf32>
    %46 = math.exp %45 : vector<2x8x8xf32>
    %cst_18 = arith.constant dense<0.000000e+00> : vector<2x8xf32>
    %47 = vector.multi_reduction <add>, %46, %cst_18 [2] : vector<2x8x8xf32> to vector<2x8xf32>
    %48 = vector.shape_cast %47 : vector<2x8xf32> to vector<2x8x1xf32>
    %49 = vector.broadcast %48 : vector<2x8x1xf32> to vector<2x8x8xf32>
    %50 = arith.divf %46, %49 : vector<2x8x8xf32>
    "tpu.trace_start"() <{level = 10 : i32, message = "bts,bsd->btd"}> : () -> ()
    %cst_19 = arith.constant dense<0.000000e+00> : vector<2x8x8xf32>
    %51 = tpu.matmul %50, %36, %cst_19 {dimension_numbers = #tpu.dot_dimension_numbers<[2], [1], [1], [2], [0, 0, 0, 1, 1, 2], [0], [0]>} : vector<2x8x8xf32>, vector<2x8x8xf32>, vector<2x8x8xf32> -> vector<2x8x8xf32>
    "tpu.trace_stop"() : () -> ()
    %c8 = arith.constant 8 : index
    %c0_20 = arith.constant 0 : index
    %52 = vector.load %arg3[%c8, %c0_20] : memref<32x32xf32, #tpu.memory_space<vmem>>, vector<8x32xf32>
    "tpu.trace_start"() <{level = 10 : i32, message = "btd,dc->btc"}> : () -> ()
    %cst_21 = arith.constant dense<0.000000e+00> : vector<2x8x32xf32>
    %53 = tpu.matmul %51, %52, %cst_21 {dimension_numbers = #tpu.dot_dimension_numbers<[2], [0], [0, 1], [1], [0, 0, 0, 1, 1, 1], [], []>} : vector<2x8x8xf32>, vector<8x32xf32>, vector<2x8x32xf32> -> vector<2x8x32xf32>
    "tpu.trace_stop"() : () -> ()
    %54 = arith.addf %33, %53 : vector<2x8x32xf32>
    %55 = vector.extract_strided_slice %4 {offsets = [0, 0, 16], sizes = [2, 8, 8], strides = [1, 1, 1]} : vector<2x8x96xf32> to vector<2x8x8xf32>
    %56 = vector.extract_strided_slice %4 {offsets = [0, 0, 48], sizes = [2, 8, 8], strides = [1, 1, 1]} : vector<2x8x96xf32> to vector<2x8x8xf32>
    %57 = vector.extract_strided_slice %4 {offsets = [0, 0, 80], sizes = [2, 8, 8], strides = [1, 1, 1]} : vector<2x8x96xf32> to vector<2x8x8xf32>
    "tpu.trace_start"() <{level = 10 : i32, message = "btd,bsd->bts"}> : () -> ()
    %cst_22 = arith.constant dense<0.000000e+00> : vector<2x8x8xf32>
    %58 = tpu.matmul %55, %56, %cst_22 {dimension_numbers = #tpu.dot_dimension_numbers<[2], [2], [1], [1], [0, 0, 0, 1, 1, 1], [0], [0]>} : vector<2x8x8xf32>, vector<2x8x8xf32>, vector<2x8x8xf32> -> vector<2x8x8xf32>
    "tpu.trace_stop"() : () -> ()
    %cst_23 = arith.constant 0.176776692 : f32
    %59 = vector.broadcast %cst_23 : f32 to vector<2x8x8xf32>
    %60 = arith.mulf %58, %59 : vector<2x8x8xf32>
    %61 = vector.broadcast %11 : vector<1x8x8xf32> to vector<2x8x8xf32>
    %62 = arith.addf %60, %61 : vector<2x8x8xf32>
    %cst_24 = arith.constant dense<0xFF800000> : vector<2x8xf32>
    %63 = vector.multi_reduction <maximumf>, %62, %cst_24 [2] : vector<2x8x8xf32> to vector<2x8xf32>
    %64 = vector.shape_cast %63 : vector<2x8xf32> to vector<2x8x1xf32>
    %65 = vector.broadcast %64 : vector<2x8x1xf32> to vector<2x8x8xf32>
    %66 = arith.subf %62, %65 : vector<2x8x8xf32>
    %67 = math.exp %66 : vector<2x8x8xf32>
    %cst_25 = arith.constant dense<0.000000e+00> : vector<2x8xf32>
    %68 = vector.multi_reduction <add>, %67, %cst_25 [2] : vector<2x8x8xf32> to vector<2x8xf32>
    %69 = vector.shape_cast %68 : vector<2x8xf32> to vector<2x8x1xf32>
    %70 = vector.broadcast %69 : vector<2x8x1xf32> to vector<2x8x8xf32>
    %71 = arith.divf %67, %70 : vector<2x8x8xf32>
    "tpu.trace_start"() <{level = 10 : i32, message = "bts,bsd->btd"}> : () -> ()
    %cst_26 = arith.constant dense<0.000000e+00> : vector<2x8x8xf32>
    %72 = tpu.matmul %71, %57, %cst_26 {dimension_numbers = #tpu.dot_dimension_numbers<[2], [1], [1], [2], [0, 0, 0, 1, 1, 2], [0], [0]>} : vector<2x8x8xf32>, vector<2x8x8xf32>, vector<2x8x8xf32> -> vector<2x8x8xf32>
    "tpu.trace_stop"() : () -> ()
    %c16 = arith.constant 16 : index
    %c0_27 = arith.constant 0 : index
    %73 = vector.load %arg3[%c16, %c0_27] : memref<32x32xf32, #tpu.memory_space<vmem>>, vector<8x32xf32>
    "tpu.trace_start"() <{level = 10 : i32, message = "btd,dc->btc"}> : () -> ()
    %cst_28 = arith.constant dense<0.000000e+00> : vector<2x8x32xf32>
    %74 = tpu.matmul %72, %73, %cst_28 {dimension_numbers = #tpu.dot_dimension_numbers<[2], [0], [0, 1], [1], [0, 0, 0, 1, 1, 1], [], []>} : vector<2x8x8xf32>, vector<8x32xf32>, vector<2x8x32xf32> -> vector<2x8x32xf32>
    "tpu.trace_stop"() : () -> ()
    %75 = arith.addf %54, %74 : vector<2x8x32xf32>
    %76 = vector.extract_strided_slice %4 {offsets = [0, 0, 24], sizes = [2, 8, 8], strides = [1, 1, 1]} : vector<2x8x96xf32> to vector<2x8x8xf32>
    %77 = vector.extract_strided_slice %4 {offsets = [0, 0, 56], sizes = [2, 8, 8], strides = [1, 1, 1]} : vector<2x8x96xf32> to vector<2x8x8xf32>
    %78 = vector.extract_strided_slice %4 {offsets = [0, 0, 88], sizes = [2, 8, 8], strides = [1, 1, 1]} : vector<2x8x96xf32> to vector<2x8x8xf32>
    "tpu.trace_start"() <{level = 10 : i32, message = "btd,bsd->bts"}> : () -> ()
    %cst_29 = arith.constant dense<0.000000e+00> : vector<2x8x8xf32>
    %79 = tpu.matmul %76, %77, %cst_29 {dimension_numbers = #tpu.dot_dimension_numbers<[2], [2], [1], [1], [0, 0, 0, 1, 1, 1], [0], [0]>} : vector<2x8x8xf32>, vector<2x8x8xf32>, vector<2x8x8xf32> -> vector<2x8x8xf32>
    "tpu.trace_stop"() : () -> ()
    %cst_30 = arith.constant 0.176776692 : f32
    %80 = vector.broadcast %cst_30 : f32 to vector<2x8x8xf32>
    %81 = arith.mulf %79, %80 : vector<2x8x8xf32>
    %82 = vector.broadcast %11 : vector<1x8x8xf32> to vector<2x8x8xf32>
    %83 = arith.addf %81, %82 : vector<2x8x8xf32>
    %cst_31 = arith.constant dense<0xFF800000> : vector<2x8xf32>
    %84 = vector.multi_reduction <maximumf>, %83, %cst_31 [2] : vector<2x8x8xf32> to vector<2x8xf32>
    %85 = vector.shape_cast %84 : vector<2x8xf32> to vector<2x8x1xf32>
    %86 = vector.broadcast %85 : vector<2x8x1xf32> to vector<2x8x8xf32>
    %87 = arith.subf %83, %86 : vector<2x8x8xf32>
    %88 = math.exp %87 : vector<2x8x8xf32>
    %cst_32 = arith.constant dense<0.000000e+00> : vector<2x8xf32>
    %89 = vector.multi_reduction <add>, %88, %cst_32 [2] : vector<2x8x8xf32> to vector<2x8xf32>
    %90 = vector.shape_cast %89 : vector<2x8xf32> to vector<2x8x1xf32>
    %91 = vector.broadcast %90 : vector<2x8x1xf32> to vector<2x8x8xf32>
    %92 = arith.divf %88, %91 : vector<2x8x8xf32>
    "tpu.trace_start"() <{level = 10 : i32, message = "bts,bsd->btd"}> : () -> ()
    %cst_33 = arith.constant dense<0.000000e+00> : vector<2x8x8xf32>
    %93 = tpu.matmul %92, %78, %cst_33 {dimension_numbers = #tpu.dot_dimension_numbers<[2], [1], [1], [2], [0, 0, 0, 1, 1, 2], [0], [0]>} : vector<2x8x8xf32>, vector<2x8x8xf32>, vector<2x8x8xf32> -> vector<2x8x8xf32>
    "tpu.trace_stop"() : () -> ()
    %c24 = arith.constant 24 : index
    %c0_34 = arith.constant 0 : index
    %94 = vector.load %arg3[%c24, %c0_34] : memref<32x32xf32, #tpu.memory_space<vmem>>, vector<8x32xf32>
    "tpu.trace_start"() <{level = 10 : i32, message = "btd,dc->btc"}> : () -> ()
    %cst_35 = arith.constant dense<0.000000e+00> : vector<2x8x32xf32>
    %95 = tpu.matmul %93, %94, %cst_35 {dimension_numbers = #tpu.dot_dimension_numbers<[2], [0], [0, 1], [1], [0, 0, 0, 1, 1, 1], [], []>} : vector<2x8x8xf32>, vector<8x32xf32>, vector<2x8x32xf32> -> vector<2x8x32xf32>
    "tpu.trace_stop"() : () -> ()
    %96 = arith.addf %75, %95 : vector<2x8x32xf32>
    %c0_36 = arith.constant 0 : index
    %c0_37 = arith.constant 0 : index
    %97 = vector.load %arg4[%c0_36, %c0_37] : memref<1x32xf32, #tpu.memory_space<vmem>>, vector<1x32xf32>
    %98 = vector.shape_cast %97 : vector<1x32xf32> to vector<1x1x32xf32>
    %99 = vector.broadcast %98 : vector<1x1x32xf32> to vector<2x8x32xf32>
    %100 = arith.addf %96, %99 : vector<2x8x32xf32>
    %c0_38 = arith.constant 0 : index
    %c0_39 = arith.constant 0 : index
    %c0_40 = arith.constant 0 : index
    %101 = vector.load %arg5[%c0_38, %c0_39, %c0_40] : memref<2x8x32xf32, #tpu.memory_space<vmem>>, vector<2x8x32xf32>
    tpu.vector_store %arg5[%c0_38, %c0_39, %c0_40], %100 {strides = array<i32>} : memref<2x8x32xf32, #tpu.memory_space<vmem>>, vector<2x8x32xf32>,
    return
  }
  func.func @transform_0(%arg0: i32) -> (i32, i32, i32) {
    %c0_i32 = arith.constant 0 : i32
    %c0_i32_0 = arith.constant 0 : i32
    %c0_i32_1 = arith.constant 0 : i32
    %c0_i32_2 = arith.constant 0 : i32
    return %c0_i32, %c0_i32_0, %c0_i32_1 : i32, i32, i32
  }
  func.func @transform_1(%arg0: i32) -> (i32, i32) {
    %c0_i32 = arith.constant 0 : i32
    %c0_i32_0 = arith.constant 0 : i32
    %c0_i32_1 = arith.constant 0 : i32
    return %c0_i32, %c0_i32_0 : i32, i32
  }
  func.func @transform_2(%arg0: i32) -> (i32, i32) {
    %c0_i32 = arith.constant 0 : i32
    %c0_i32_0 = arith.constant 0 : i32
    %c0_i32_1 = arith.constant 0 : i32
    return %c0_i32, %c0_i32_0 : i32, i32
  }
  func.func @transform_3(%arg0: i32) -> (i32, i32) {
    %c0_i32 = arith.constant 0 : i32
    %c0_i32_0 = arith.constant 0 : i32
    %c0_i32_1 = arith.constant 0 : i32
    return %c0_i32, %c0_i32_0 : i32, i32
  }
  func.func @transform_4(%arg0: i32) -> (i32, i32, i32) {
    %c0_i32 = arith.constant 0 : i32
    %c0_i32_0 = arith.constant 0 : i32
    %c0_i32_1 = arith.constant 0 : i32
    %c0_i32_2 = arith.constant 0 : i32
    return %c0_i32, %c0_i32_0, %c0_i32_1 : i32, i32, i32
  }
}

</mosaic_0001>

<bundles_post_ra>
// kernel: tpu_custom_call.1
= control target key start
LH: loop header
LB: loop body
LE: loop exit
PB: predicated region body
PF: predicated region fallthrough
CT: control target
= control target key end

     0   :  { %9 = vsyncpa [#allocation3], 0  ;;  %s2407_s0 = inlined_call_operand.hbm [shape: f32[2,8,32], index: 0, kind: input, shape index: {}]   ;;  %s2408_s1 = inlined_call_operand.hbm [shape: f32[32,96], index: 1, kind: input, shape index: {}]   ;;  %s2409_s2 = inlined_call_operand.hbm [shape: f32[32,32], index: 2, kind: input, shape index: {}]   ;;  %s2410_s3 = inlined_call_operand.vmem [shape: f32[1,32], index: 3, kind: input, shape index: {}]   ;;  %s2411_s4 = inlined_call_operand.hbm [shape: f32[2,8,32], index: 4, kind: output, shape index: {}]  }
   0x1   :  { %10 = vsyncpa [#allocation6], 0 }
   0x2   :  { %11 = vsyncpa [#allocation4], 0  ;;  %s2183_s15 = smov [#allocation5]   ;;  %s2184_s17 = smov [#allocation2]  }
   0x3   :  { %s29_s16 = sshll.u32 %s2183_s15, 4  ;;  %s17_s18 = sshll.u32 %s2184_s17, 4  ;;  %s30_s16 = int_to_ptr.vmem [resolvable:$true] %s29_s16  ;;  %s18_s18 = int_to_ptr.vmem [resolvable:$true] %s17_s18 }
   0x4   :  { %s2105_s19 = scalar_lea.vmem %s30_s16, 512  ;;  %p2110_p1 = scmp.lt.s32.totalorder %s30_s16, %s30_s16 }
   0x5   :  { %p2106_p0 = scmp.ne.s32.totalorder %s30_s16, %s2105_s19  ;;  %p2111_p2 = scmp.lt.s32.totalorder %s2105_s19, %s2105_s19 }
   0x7   :  { %p2112_p3 = por %p2111_p2, %p2110_p1 }
   0x9   :  { %p2113_p4 = pnand %p2112_p3, %p2106_p0 }
   0xb   :  { %2116 = shalt.err (!%p2113_p4)
}
   0xc   :  { %s2185_s20 = smov 128   ;;  %s2186_s21 = smov 8  }
   0xd   :  { %35 = dma.hbm_to_vmem [thread:$0]  %s2408_s1, 512, %s30_s16, [#allocation6], %s2185_s20, %s2185_s20, %s2186_s21  }
   0xe   :  { %s2125_s24 = scalar_lea.vmem %s18_s18, 256  ;;  %p2130_p6 = scmp.lt.s32.totalorder %s18_s18, %s18_s18 }
   0xf   :  { %p2126_p5 = scmp.ne.s32.totalorder %s18_s18, %s2125_s24  ;;  %p2131_p7 = scmp.lt.s32.totalorder %s2125_s24, %s2125_s24 }
  0x11   :  { %p2132_p8 = por %p2131_p7, %p2130_p6 }
  0x13   :  { %p2133_p9 = pnand %p2132_p8, %p2126_p5 }
  0x15   :  { %2136 = shalt.err (!%p2133_p9)
}
  0x16   :  { %23 = dma.hbm_to_vmem [thread:$0]  %s2407_s0, 256, %s18_s18, [#allocation3], %s2185_s20, %s2185_s20, %s2186_s21  }
  0x17   :  { %s2187_s27 = smov [#allocation7]  }
  0x18   :  { %s41_s28 = sshll.u32 %s2187_s27, 4  ;;  %s42_s28 = int_to_ptr.vmem [resolvable:$true] %s41_s28 }
  0x19   :  { %s2145_s29 = scalar_lea.vmem %s42_s28, 512  ;;  %p2150_p11 = scmp.lt.s32.totalorder %s42_s28, %s42_s28 }
  0x1a   :  { %p2146_p10 = scmp.ne.s32.totalorder %s42_s28, %s2145_s29  ;;  %p2151_p12 = scmp.lt.s32.totalorder %s2145_s29, %s2145_s29 }
  0x1c   :  { %p2152_p13 = por %p2151_p12, %p2150_p11 }
  0x1e   :  { %p2153_p0 = pnand %p2152_p13, %p2146_p10 }
  0x20   :  { %2156 = shalt.err (!%p2153_p0)
}
  0x21   :  { %47 = dma.hbm_to_vmem [thread:$0]  %s2409_s2, 512, %s42_s28, [#allocation6], %s2185_s20, %s2185_s20, %s2186_s21  }
  0x22   :  { %2177 = dma.done.wait [#allocation3], 256  }
  0x23   :  { %2178 = vsyncadd [#allocation3], 4294967040 }
  0x24   :  { %2179 = dma.done.wait [#allocation6], 1024  }
  0x25   :  { %2180 = vsyncadd [#allocation6], 4294966272  ;;  %vm65_vm0 = vcmask 261120   ;;  %v64_v0 = vld [vmem:[#allocation5 + $0x18] sm:$0xff]  ;;  %v63_v1 = vld [vmem:[#allocation5 + $0x10] sm:$0xff]  ;;  %v2188_v6 = vmov 0.0   ;;  %v147_v11 = vlaneseq }
  0x26   :  { %1934 = vmatprep.subr.mxu0 %v64_v0  ;;  %v59_v2 = vld [vmem:[#allocation2] sm:$0xff]  ;;  %v62_v3 = vld [vmem:[#allocation5 + $0x8] sm:$0xff]  ;;  %v61_v4 = vld [vmem:[#allocation5] sm:$0xff]  ;;  %1945 = vmatprep.subr.mxu1 %v2188_v6  ;;  %vm2189_vm1 = vmmov 0   ;;  %s2190_s0 = smov 96   ;;  %vm156_vm2 = vcmask 64512  }
  0x27   :  { %1935 = vmatpush3.msra.mxu0 %v64_v0  ;;  %1942 = vmatprep.mubr.msk.f32.mxu0 %vm65_vm0, %v59_v2  ;;  %v60_v5 = vld [vmem:[#allocation2 + $0x8] sm:$0xff]  ;;  %v148_v12 = vshrl.u32 %v147_v11, 7  ;;  %v150_v13 = vand.u32 127, %v147_v11  ;;  %v2191_v15 = vmov -1e+30   ;;  %s2192_s2 = smov 64  }
  0x28   :  { %1936 = vmatprep.subr.mxu0 %v63_v1  ;;  %1947 = vmatprep.mubr.msk.f32.mxu1 %vm2189_vm1, %v2188_v6  ;;  %s2193_s5 = smov 88   ;;  %s2194_s6 = smov 120  }
  0x29   :  { %1937 = vmatpush3.msra.mxu0 %v63_v1  ;;  %vm151_vm3 = vcmp.le.s32.totalorder %v150_v13, %v148_v12  ;;  %s2195_s7 = smov 56   ;;  %s2196_s8 = smov 112   ;;  %v486_v12 = vld [vmem:[#allocation7] sm:$0xff] }
  0x2a   :  { %1938 = vmatprep.subr.mxu0 %v62_v3  ;;  %v2272_v16 = vsel %vm151_vm3, 0.0, %v2191_v15  ;;  %s2197_s9 = smov 80   ;;  %s2198_s10 = smov 48  }
  0x2b   :  { %1939 = vmatpush3.msra.mxu0 %v62_v3  ;;  %s2199_s11 = smov 72   ;;  %s2200_s12 = smov 104  }
  0x2c   :  { %1940 = vmatprep.subr.mxu0 %v61_v4  ;;  %s2201_s13 = smov 40   ;;  %s2202_s16 = smov [#allocation8]  }
  0x2d   :  { %1941 = vmatpush3.msra.mxu0 %v61_v4  ;;  %s1836_s17 = sshll.u32 %s2202_s16, 4  ;;  %s1837_s17 = int_to_ptr.vmem [resolvable:$true] %s1836_s17 }
  0x2e   :  { %1943 = vmatmul.mubr.msk.f32.vlgmr.msra.gmra.mxu0 %vm65_vm0, %v60_v5  ;;  %1955 = vmatprep.subr.mxu0 %v2188_v6  ;;  %s2157_s18 = scalar_lea.vmem %s1837_s17, 256  ;;  %p2162_p2 = scmp.lt.s32.totalorder %s1837_s17, %s1837_s17 }
  0x2f   :  { %1957 = vmatprep.mubr.msk.f32.mxu0 %vm2189_vm1, %v2188_v6  ;;  %p2158_p1 = scmp.ne.s32.totalorder %s1837_s17, %s2157_s18  ;;  %p2163_p3 = scmp.lt.s32.totalorder %s2157_s18, %s2157_s18 }
  0x31   :  { %p2164_p4 = por %p2163_p3, %p2162_p2 }
  0x33   :  { %p2165_p5 = pnand %p2164_p4, %p2158_p1 }
  0xee   :  { %v2254_v7 = vpop.f32.mrf.mxu0 }
  0xf0   :  { %v2256_v8 = vpop.f32.mrf.mxu0 }
  0xf1   :  { %154 = vrot.lane.b32.xlu0 %v2256_v8, %s2190_s0 }
  0xf5   :  { %232 = vrot.lane.b32.xlu0 %v2254_v7, %s2190_s0 }
 0x163   :  { %v155_v9 = vpop.permute.xlu0 %154 }
 0x164   :  { %1946 = vmatpush3.xpose.msk.msra.mxu1 %vm156_vm2, %v155_v9 }
 0x165   :  { %1950 = vmatprep.subr.mxu1 %v2188_v6 }
 0x167   :  { %1948 = vmatmul.mubr.msk.f32.vlgmr.msra.gmra.mxu1 %vm156_vm2, %v2256_v8  ;;  %v233_v10 = vpop.permute.xlu0 %232 }
 0x168   :  { %1951 = vmatpush3.xpose.msk.msra.mxu1 %vm156_vm2, %v233_v10  ;;  %1952 = vmatprep.mubr.msk.f32.mxu1 %vm2189_vm1, %v2188_v6 }
 0x169   :  { %1960 = vmatprep.subr.mxu1 %v2188_v6 }
 0x16b   :  { %1953 = vmatmul.mubr.msk.f32.vlgmr.msra.gmra.mxu1 %vm156_vm2, %v2254_v7 }
 0x16c   :  { %1962 = vmatprep.mubr.msk.f32.mxu1 %vm2189_vm1, %v2188_v6 }
 0x227   :  { %v227_v14 = vpop.f32.mrf.mxu1 }
 0x228   :  { %v308_v17 = vmul.f32 0.17677669, %v227_v14 }
 0x229   :  { %v1949_v18 = vpop.f32.mrf.mxu1 }
 0x22a   :  { %v310_v19 = vadd.f32 %v308_v17, %v2272_v16 }
 0x22b   :  { %v304_v20 = vpop.f32.mrf.mxu1 }
 0x22c   :  { %v309_v21 = vmul.f32 0.17677669, %v304_v20  ;;  %v312_v22 = vsel %vm156_vm2, %v310_v19, -inf }
 0x22d   :  { %313 = vmax.xlane.f32.xlu1 %v312_v22  ;;  %v1954_v23 = vpop.f32.mrf.mxu1 }
 0x22e   :  { %v311_v24 = vadd.f32 %v309_v21, %v2272_v16 }
 0x230   :  { %v315_v25 = vsel %vm156_vm2, %v311_v24, -inf }
 0x231   :  { %316 = vmax.xlane.f32.xlu1 %v315_v25 }
 0x242   :  { %334 = vrot.lane.b32.xlu1 %v2256_v8, %s2192_s2 }
 0x246   :  { %410 = vrot.lane.b32.xlu1 %v2254_v7, %s2192_s2 }
 0x24a   :  { %489 = vrot.lane.b32.xlu1 %v2256_v8, %s2193_s5 }
 0x24e   :  { %567 = vrot.lane.b32.xlu1 %v2254_v7, %s2193_s5 }
 0x2b6   :  { %v314_v26 = vpop.xlane.xlu1 %313 }
 0x2b7   :  { %v318_v27 = vsub.f32 %v310_v19, %v314_v26 }
 0x2b9   :  { %v320_v28 = vmul.f32 1.442695, %v318_v27 }
 0x2ba   :  { %v317_v29 = vpop.xlane.xlu1 %316 }
 0x2bb   :  { %2065 = vpow2.f32 %v320_v28  ;;  %v319_v30 = vsub.f32 %v311_v24, %v317_v29  ;;  %v821_v24 = vld [vmem:[#allocation7 + $0x8] sm:$0xff] }
 0x2bd   :  { %v322_v31 = vmul.f32 1.442695, %v319_v30 }
 0x2be   :  { %v335_v32 = vpop.permute.xlu1 %334 }
 0x2bf   :  { %2067 = vpow2.f32 %v322_v31  ;;  %1956 = vmatpush3.msra.mxu0 %v335_v32 }
 0x2c0   :  { %1965 = vmatprep.subr.mxu0 %v2188_v6 }
 0x2c2   :  { %v411_v33 = vpop.permute.xlu1 %410 }
 0x2c3   :  { %1961 = vmatpush3.msra.mxu1 %v411_v33 }
 0x2c4   :  { %1970 = vmatprep.subr.mxu1 %v2188_v6 }
 0x2c6   :  { %v490_v38 = vpop.permute.xlu1 %489 }
 0x2c8   :  { %v2066_v34 = vpop.eup %2065 }
 0x2c9   :  { %v324_v35 = vsel %vm156_vm2, %v2066_v34, 0.0 }
 0x2ca   :  { %325 = vadd.xlane.f32.xlu0 %v324_v35  ;;  %v568_v39 = vpop.permute.xlu1 %567 }
 0x2cc   :  { %v2068_v36 = vpop.eup %2067 }
 0x2cd   :  { %v327_v37 = vsel %vm156_vm2, %v2068_v36, 0.0 }
 0x2ce   :  { %328 = vadd.xlane.f32.xlu1 %v327_v37 }
 0x2df   :  { %565 = vrot.lane.b32.xlu1 %v2254_v7, %s2194_s6 }
 0x2e0   :  { %487 = vrot.lane.b32.xlu0 %v2256_v8, %s2194_s6 }
 0x353   :  { %v326_v40 = vpop.xlane.xlu0 %325 }
 0x354   :  { %2069 = vrcp.f32 %v326_v40 }
 0x357   :  { %v329_v41 = vpop.xlane.xlu1 %328  ;;  %v488_v46 = vpop.permute.xlu0 %487 }
 0x358   :  { %2071 = vrcp.f32 %v329_v41 }
 0x35b   :  { %v566_v47 = vpop.permute.xlu1 %565 }
 0x361   :  { %v2070_v42 = vpop.eup %2069 }
 0x362   :  { %v331_v43 = vmul.f32 %v2070_v42, %v2066_v34 }
 0x364   :  { %1958 = vmatmul.mubr.msk.f32.vlgmr.msra.gmra.mxu0 %vm156_vm2, %v331_v43 }
 0x365   :  { %v2072_v44 = vpop.eup %2071  ;;  %1966 = vmatpush3.xpose.msk.msra.mxu0 %vm156_vm2, %v490_v38  ;;  %1967 = vmatprep.mubr.msk.f32.mxu0 %vm2189_vm1, %v2188_v6 }
 0x366   :  { %v333_v45 = vmul.f32 %v2072_v44, %v2068_v36  ;;  %1975 = vmatprep.subr.mxu0 %v2188_v6 }
 0x368   :  { %1963 = vmatmul.mubr.msk.f32.vlgmr.msra.gmra.mxu1 %vm156_vm2, %v333_v45  ;;  %1968 = vmatmul.mubr.msk.f32.vlgmr.msra.gmra.mxu0 %vm156_vm2, %v488_v46 }
 0x369   :  { %1971 = vmatpush3.xpose.msk.msra.mxu1 %vm156_vm2, %v568_v39  ;;  %1972 = vmatprep.mubr.msk.f32.mxu1 %vm2189_vm1, %v2188_v6 }
 0x36a   :  { %1980 = vmatprep.subr.mxu1 %v2188_v6  ;;  %1977 = vmatprep.mubr.msk.f32.mxu0 %vm2189_vm1, %v2188_v6 }
 0x36c   :  { %1973 = vmatmul.mubr.msk.f32.vlgmr.msra.gmra.mxu1 %vm156_vm2, %v566_v47 }
 0x36d   :  { %1982 = vmatprep.mubr.msk.f32.mxu1 %vm2189_vm1, %v2188_v6 }
 0x424   :  { %v406_v48 = vpop.f32.mrf.mxu0 }
 0x426   :  { %v1959_v49 = vpop.f32.mrf.mxu0 }
 0x428   :  { %v482_v50 = vpop.f32.mrf.mxu1  ;;  %v561_v51 = vpop.f32.mrf.mxu0 }
 0x429   :  { %v643_v52 = vmul.f32 0.17677669, %v561_v51 }
 0x42a   :  { %v1964_v53 = vpop.f32.mrf.mxu1  ;;  %v1969_v54 = vpop.f32.mrf.mxu0 }
 0x42b   :  { %v645_v55 = vadd.f32 %v643_v52, %v2272_v16 }
 0x42c   :  { %v639_v56 = vpop.f32.mrf.mxu1 }
 0x42d   :  { %v644_v57 = vmul.f32 0.17677669, %v639_v56  ;;  %v647_v58 = vsel %vm156_vm2, %v645_v55, -inf }
 0x42e   :  { %v1974_v59 = vpop.f32.mrf.mxu1  ;;  %648 = vmax.xlane.f32.xlu1 %v647_v58 }
 0x42f   :  { %v646_v60 = vadd.f32 %v644_v57, %v2272_v16 }
 0x431   :  { %v650_v61 = vsel %vm156_vm2, %v646_v60, -inf }
 0x432   :  { %651 = vmax.xlane.f32.xlu0 %v650_v61 }
 0x448   :  { %745 = vrot.lane.b32.xlu0 %v2254_v7, %s2195_s7 }
 0x44c   :  { %984 = vrot.lane.b32.xlu0 %v2256_v8, %s2196_s8 }
 0x4b7   :  { %v649_v62 = vpop.xlane.xlu1 %648 }
 0x4b8   :  { %v653_v63 = vsub.f32 %v645_v55, %v649_v62 }
 0x4ba   :  { %v655_v0 = vmul.f32 1.442695, %v653_v63 }
 0x4bb   :  { %v652_v1 = vpop.xlane.xlu0 %651 }
 0x4bc   :  { %2073 = vpow2.f32 %v655_v0  ;;  %v654_v2 = vsub.f32 %v646_v60, %v652_v1  ;;  %v1318_v0 = vld [vmem:[#allocation7 + $0x10] sm:$0xff] }
 0x4be   :  { %v657_v3 = vmul.f32 1.442695, %v654_v2 }
 0x4bf   :  { %v746_v4 = vpop.permute.xlu0 %745 }
 0x4c0   :  { %2075 = vpow2.f32 %v657_v3  ;;  %1981 = vmatpush3.msra.mxu1 %v746_v4 }
 0x4c1   :  { %1990 = vmatprep.subr.mxu1 %v486_v12 }
 0x4c3   :  { %v985_v29 = vpop.permute.xlu0 %984 }
 0x4c9   :  { %v2074_v5 = vpop.eup %2073 }
 0x4ca   :  { %v659_v9 = vsel %vm156_vm2, %v2074_v5, 0.0 }
 0x4cb   :  { %660 = vadd.xlane.f32.xlu1 %v659_v9 }
 0x4cd   :  { %v2076_v10 = vpop.eup %2075 }
 0x4ce   :  { %v662_v11 = vsel %vm156_vm2, %v2076_v10, 0.0 }
 0x4cf   :  { %663 = vadd.xlane.f32.xlu1 %v662_v11 }
 0x4e0   :  { %669 = vrot.lane.b32.xlu1 %v2256_v8, %s2195_s7 }
 0x4e4   :  { %986 = vrot.lane.b32.xlu1 %v2256_v8, %s2197_s9 }
 0x4e8   :  { %1064 = vrot.lane.b32.xlu1 %v2254_v7, %s2197_s9 }
 0x4ec   :  { %1062 = vrot.lane.b32.xlu1 %v2254_v7, %s2196_s8 }
 0x554   :  { %v661_v13 = vpop.xlane.xlu1 %660 }
 0x555   :  { %2077 = vrcp.f32 %v661_v13 }
 0x558   :  { %v664_v14 = vpop.xlane.xlu1 %663 }
 0x559   :  { %2079 = vrcp.f32 %v664_v14 }
 0x55c   :  { %v670_v15 = vpop.permute.xlu1 %669 }
 0x55d   :  { %1976 = vmatpush3.msra.mxu0 %v670_v15 }
 0x55e   :  { %1985 = vmatprep.subr.mxu0 %v821_v24 }
 0x560   :  { %v987_v19 = vpop.permute.xlu1 %986 }
 0x562   :  { %v2078_v17 = vpop.eup %2077 }
 0x563   :  { %v666_v18 = vmul.f32 %v2078_v17, %v2074_v5 }
 0x564   :  { %v1065_v22 = vpop.permute.xlu1 %1064 }
 0x565   :  { %1978 = vmatmul.mubr.msk.f32.vlgmr.msra.gmra.mxu0 %vm156_vm2, %v666_v18 }
 0x566   :  { %v2080_v20 = vpop.eup %2079  ;;  %1986 = vmatpush3.msra.mxu0 %v821_v24 }
 0x567   :  { %v668_v21 = vmul.f32 %v2080_v20, %v2076_v10  ;;  %1995 = vmatprep.subr.mxu0 %v2188_v6 }
 0x568   :  { %v1063_v23 = vpop.permute.xlu1 %1062 }
 0x569   :  { %1983 = vmatmul.mubr.msk.f32.vlgmr.msra.gmra.mxu1 %vm156_vm2, %v668_v21 }
 0x56a   :  { %1992 = vmatprep.mubr.msk.f32.mxu1 %vm156_vm2, %v406_v48  ;;  %1991 = vmatpush3.msra.mxu1 %v486_v12 }
 0x56b   :  { %2000 = vmatprep.subr.mxu1 %v2188_v6 }
 0x56d   :  { %1993 = vmatmul.mubr.msk.f32.vlgmr.msra.gmra.mxu1 %vm156_vm2, %v482_v50 }
 0x56e   :  { %2001 = vmatpush3.xpose.msk.msra.mxu1 %vm156_vm2, %v1065_v22  ;;  %2002 = vmatprep.mubr.msk.f32.mxu1 %vm2189_vm1, %v2188_v6 }
 0x56f   :  { %2010 = vmatprep.subr.mxu1 %v2188_v6 }
 0x571   :  { %2003 = vmatmul.mubr.msk.f32.vlgmr.msra.gmra.mxu1 %vm156_vm2, %v1063_v23 }
 0x572   :  { %2012 = vmatprep.mubr.msk.f32.mxu1 %vm2189_vm1, %v2188_v6 }
 0x625   :  { %v741_v25 = vpop.f32.mrf.mxu0 }
 0x626   :  { %1987 = vmatprep.mubr.msk.f32.mxu0 %vm156_vm2, %v741_v25 }
 0x627   :  { %v1979_v26 = vpop.f32.mrf.mxu0 }
 0x629   :  { %v817_v27 = vpop.f32.mrf.mxu1 }
 0x62a   :  { %1988 = vmatmul.mubr.msk.f32.vlgmr.msra.gmra.mxu0 %vm156_vm2, %v817_v27 }
 0x62b   :  { %1996 = vmatpush3.xpose.msk.msra.mxu0 %vm156_vm2, %v987_v19  ;;  %v1984_v28 = vpop.f32.mrf.mxu1  ;;  %1997 = vmatprep.mubr.msk.f32.mxu0 %vm2189_vm1, %v2188_v6 }
 0x62c   :  { %2005 = vmatprep.subr.mxu0 %v2188_v6 }
 0x62d   :  { %v2335_v30 = vpop.f32.mrf.mxu1 }
 0x62e   :  { %1998 = vmatmul.mubr.msk.f32.vlgmr.msra.gmra.mxu0 %vm156_vm2, %v985_v29 }
 0x62f   :  { %v2338_v31 = vpop.f32.mrf.mxu1  ;;  %2007 = vmatprep.mubr.msk.f32.mxu0 %vm2189_vm1, %v2188_v6 }
 0x631   :  { %v1136_v32 = vpop.f32.mrf.mxu1 }
 0x632   :  { %v1141_v33 = vmul.f32 0.17677669, %v1136_v32 }
 0x633   :  { %v2004_v34 = vpop.f32.mrf.mxu1 }
 0x634   :  { %v1143_v35 = vadd.f32 %v1141_v33, %v2272_v16 }
 0x636   :  { %v1147_v36 = vsel %vm156_vm2, %v1143_v35, -inf }
 0x637   :  { %1148 = vmax.xlane.f32.xlu1 %v1147_v36 }
 0x648   :  { %1166 = vrot.lane.b32.xlu1 %v2256_v8, %s2198_s10 }
 0x64c   :  { %1404 = vrot.lane.b32.xlu1 %v2256_v8, %s2199_s11 }
 0x650   :  { %1482 = vrot.lane.b32.xlu1 %v2254_v7, %s2199_s11 }
 0x654   :  { %1480 = vrot.lane.b32.xlu1 %v2254_v7, %s2200_s12 }
 0x6c0   :  { %v1149_v37 = vpop.xlane.xlu1 %1148 }
 0x6c1   :  { %v1151_v39 = vsub.f32 %v1143_v35, %v1149_v37 }
 0x6c3   :  { %v1154_v40 = vmul.f32 1.442695, %v1151_v39  ;;  %v1736_v39 = vld [vmem:[#allocation7 + $0x18] sm:$0xff] }
 0x6c4   :  { %v1167_v38 = vpop.permute.xlu1 %1166 }
 0x6c5   :  { %2006 = vmatpush3.msra.mxu0 %v1167_v38  ;;  %2081 = vpow2.f32 %v1154_v40 }
 0x6c6   :  { %2015 = vmatprep.subr.mxu0 %v1318_v0 }
 0x6c8   :  { %v1405_v60 = vpop.permute.xlu1 %1404 }
 0x6cc   :  { %v1483_v11 = vpop.permute.xlu1 %1482 }
 0x6d0   :  { %v1481_v14 = vpop.permute.xlu1 %1480 }
 0x6d2   :  { %v2082_v48 = vpop.eup %2081 }
 0x6d3   :  { %v1159_v49 = vsel %vm156_vm2, %v2082_v48, 0.0 }
 0x6ea   :  { %v2349_v41 = vpop.f32.mrf.mxu0 }
 0x6eb   :  { %v981_v21 = vadd.f32 %v2335_v30, %v2349_v41 }
 0x6ec   :  { %v2351_v42 = vpop.f32.mrf.mxu0 }
 0x6ed   :  { %v976_v23 = vadd.f32 %v2338_v31, %v2351_v42 }
 0x6ee   :  { %v1058_v43 = vpop.f32.mrf.mxu0 }
 0x6ef   :  { %v1140_v44 = vmul.f32 0.17677669, %v1058_v43 }
 0x6f0   :  { %v1999_v45 = vpop.f32.mrf.mxu0 }
 0x6f1   :  { %v1142_v46 = vadd.f32 %v1140_v44, %v2272_v16 }
 0x6f3   :  { %v1144_v47 = vsel %vm156_vm2, %v1142_v46, -inf }
 0x6f4   :  { %1145 = vmax.xlane.f32.xlu0 %v1144_v47  ;;  %v1883_v47 = vld [vmem:[%s2410_s3] ss:$0 sm:$0xff] }
 0x6f8   :  { %1160 = vadd.xlane.f32.xlu0 %v1159_v49 }
 0x77d   :  { %v1146_v50 = vpop.xlane.xlu0 %1145 }
 0x77e   :  { %v1150_v51 = vsub.f32 %v1142_v46, %v1146_v50 }
 0x780   :  { %v1152_v52 = vmul.f32 1.442695, %v1150_v51 }
 0x781   :  { %v1161_v55 = vpop.xlane.xlu0 %1160 }
 0x782   :  { %2083 = vpow2.f32 %v1152_v52 }
 0x783   :  { %2085 = vrcp.f32 %v1161_v55 }
 0x78f   :  { %v2084_v53 = vpop.eup %2083 }
 0x790   :  { %v1156_v54 = vsel %vm156_vm2, %v2084_v53, 0.0  ;;  %v2086_v57 = vpop.eup %2085 }
 0x791   :  { %1157 = vadd.xlane.f32.xlu0 %v1156_v54  ;;  %v1165_v59 = vmul.f32 %v2086_v57, %v2082_v48 }
 0x7a7   :  { %1242 = vrot.lane.b32.xlu0 %v2254_v7, %s2198_s10 }
 0x7ab   :  { %1402 = vrot.lane.b32.xlu0 %v2256_v8, %s2200_s12 }
 0x81a   :  { %v1158_v56 = vpop.xlane.xlu0 %1157 }
 0x81b   :  { %2087 = vrcp.f32 %v1158_v56 }
 0x81e   :  { %v1243_v58 = vpop.permute.xlu0 %1242 }
 0x81f   :  { %2011 = vmatpush3.msra.mxu1 %v1243_v58 }
 0x820   :  { %2013 = vmatmul.mubr.msk.f32.vlgmr.msra.gmra.mxu1 %vm156_vm2, %v1165_v59  ;;  %2020 = vmatprep.subr.mxu1 %v2188_v6 }
 0x821   :  { %2021 = vmatpush3.xpose.msk.msra.mxu1 %vm156_vm2, %v1405_v60  ;;  %2022 = vmatprep.mubr.msk.f32.mxu1 %vm2189_vm1, %v2188_v6 }
 0x822   :  { %v1403_v61 = vpop.permute.xlu0 %1402  ;;  %2030 = vmatprep.subr.mxu1 %v2188_v6 }
 0x824   :  { %2023 = vmatmul.mubr.msk.f32.vlgmr.msra.gmra.mxu1 %vm156_vm2, %v1403_v61 }
 0x825   :  { %2032 = vmatprep.mubr.msk.f32.mxu1 %vm2189_vm1, %v2188_v6 }
 0x828   :  { %v2088_v62 = vpop.eup %2087 }
 0x829   :  { %v1163_v63 = vmul.f32 %v2088_v62, %v2084_v53 }
 0x82b   :  { %2008 = vmatmul.mubr.msk.f32.vlgmr.msra.gmra.mxu0 %vm156_vm2, %v1163_v63 }
 0x82c   :  { %2016 = vmatpush3.msra.mxu0 %v1318_v0 }
 0x82d   :  { %2025 = vmatprep.subr.mxu0 %v2188_v6 }
 0x8e0   :  { %v1314_v1 = vpop.f32.mrf.mxu1 }
 0x8e2   :  { %v2014_v2 = vpop.f32.mrf.mxu1 }
 0x8e4   :  { %v1476_v3 = vpop.f32.mrf.mxu1 }
 0x8e5   :  { %v1558_v4 = vmul.f32 0.17677669, %v1476_v3 }
 0x8e6   :  { %v2024_v5 = vpop.f32.mrf.mxu1 }
 0x8e7   :  { %v1560_v9 = vadd.f32 %v1558_v4, %v2272_v16 }
 0x8e9   :  { %v1562_v10 = vsel %vm156_vm2, %v1560_v9, -inf }
 0x8ea   :  { %1563 = vmax.xlane.f32.xlu0 %v1562_v10 }
 0x8eb   :  { %v1238_v12 = vpop.f32.mrf.mxu0 }
 0x8ec   :  { %2017 = vmatprep.mubr.msk.f32.mxu0 %vm156_vm2, %v1238_v12 }
 0x8ed   :  { %v2009_v13 = vpop.f32.mrf.mxu0  ;;  %2018 = vmatmul.mubr.msk.f32.vlgmr.msra.gmra.mxu0 %vm156_vm2, %v1314_v1 }
 0x8ee   :  { %2026 = vmatpush3.xpose.msk.msra.mxu0 %vm156_vm2, %v1483_v11  ;;  %2027 = vmatprep.mubr.msk.f32.mxu0 %vm2189_vm1, %v2188_v6 }
 0x8ef   :  { %2035 = vmatprep.subr.mxu0 %v2188_v6 }
 0x8f1   :  { %2028 = vmatmul.mubr.msk.f32.vlgmr.msra.gmra.mxu0 %vm156_vm2, %v1481_v14 }
 0x8f2   :  { %2037 = vmatprep.mubr.msk.f32.mxu0 %vm2189_vm1, %v2188_v6 }
 0x973   :  { %v1564_v15 = vpop.xlane.xlu0 %1563 }
 0x974   :  { %v1568_v17 = vsub.f32 %v1560_v9, %v1564_v15 }
 0x976   :  { %v1570_v18 = vmul.f32 1.442695, %v1568_v17 }
 0x978   :  { %2089 = vpow2.f32 %v1570_v18 }
 0x985   :  { %v2090_v19 = vpop.eup %2089 }
 0x986   :  { %v1574_v20 = vsel %vm156_vm2, %v2090_v19, 0.0 }
 0x987   :  { %1575 = vadd.xlane.f32.xlu0 %v1574_v20 }
 0x9ad   :  { %v2019_v22 = vpop.f32.mrf.mxu0 }
 0x9ae   :  { %v1401_v24 = vadd.f32 %v2019_v22, %v981_v21 }
 0x9af   :  { %v1391_v25 = vpop.f32.mrf.mxu0 }
 0x9b0   :  { %v1400_v26 = vadd.f32 %v1391_v25, %v976_v23 }
 0x9b1   :  { %v1554_v27 = vpop.f32.mrf.mxu0 }
 0x9b2   :  { %v1559_v6 = vmul.f32 0.17677669, %v1554_v27 }
 0x9b3   :  { %v2029_v28 = vpop.f32.mrf.mxu0 }
 0x9b4   :  { %v1561_v29 = vadd.f32 %v1559_v6, %v2272_v16 }
 0x9b6   :  { %v1565_v32 = vsel %vm156_vm2, %v1561_v29, -inf }
 0x9b7   :  { %1566 = vmax.xlane.f32.xlu1 %v1565_v32 }
 0x9c8   :  { %1584 = vrot.lane.b32.xlu1 %v2256_v8, %s2201_s13 }
 0xa10   :  { %v1576_v33 = vpop.xlane.xlu0 %1575 }
 0xa11   :  { %2091 = vrcp.f32 %v1576_v33 }
 0xa1e   :  { %v2092_v34 = vpop.eup %2091 }
 0xa1f   :  { %v1581_v37 = vmul.f32 %v2092_v34, %v2090_v19 }
 0xa40   :  { %v1567_v30 = vpop.xlane.xlu1 %1566 }
 0xa41   :  { %v1569_v35 = vsub.f32 %v1561_v29, %v1567_v30 }
 0xa43   :  { %v1572_v31 = vmul.f32 1.442695, %v1569_v35 }
 0xa44   :  { %v1585_v36 = vpop.permute.xlu1 %1584 }
 0xa45   :  { %2093 = vpow2.f32 %v1572_v31  ;;  %2031 = vmatpush3.msra.mxu1 %v1585_v36 }
 0xa46   :  { %2033 = vmatmul.mubr.msk.f32.vlgmr.msra.gmra.mxu1 %vm156_vm2, %v1581_v37  ;;  %2040 = vmatprep.subr.mxu1 %v1736_v39 }
 0xa47   :  { %2041 = vmatpush3.msra.mxu1 %v1736_v39 }
 0xa52   :  { %v2094_v38 = vpop.eup %2093 }
 0xa53   :  { %v1577_v16 = vsel %vm156_vm2, %v2094_v38, 0.0 }
 0xa54   :  { %1578 = vadd.xlane.f32.xlu0 %v1577_v16 }
 0xa6a   :  { %1660 = vrot.lane.b32.xlu0 %v2254_v7, %s2201_s13 }
 0xadd   :  { %v1579_v8 = vpop.xlane.xlu0 %1578 }
 0xade   :  { %2095 = vrcp.f32 %v1579_v8 }
 0xae1   :  { %v1661_v40 = vpop.permute.xlu0 %1660 }
 0xae2   :  { %2036 = vmatpush3.msra.mxu0 %v1661_v40 }
 0xaeb   :  { %v2096_v41 = vpop.eup %2095 }
 0xaec   :  { %v1583_v42 = vmul.f32 %v2096_v41, %v2094_v38 }
 0xaee   :  { %2038 = vmatmul.mubr.msk.f32.vlgmr.msra.gmra.mxu0 %vm156_vm2, %v1583_v42 }
 0xb06   :  { %v1656_v43 = vpop.f32.mrf.mxu1 }
 0xb07   :  { %2042 = vmatprep.mubr.msk.f32.mxu1 %vm156_vm2, %v1656_v43 }
 0xb08   :  { %v2034_v44 = vpop.f32.mrf.mxu1 }
 0xbae   :  { %v1732_v45 = vpop.f32.mrf.mxu0 }
 0xbaf   :  { %2043 = vmatmul.mubr.msk.f32.vlgmr.msra.gmra.mxu1 %vm156_vm2, %v1732_v45 }
 0xbb0   :  { %v2039_v46 = vpop.f32.mrf.mxu0 }
 0xc6f   :  { %v2044_v7 = vpop.f32.mrf.mxu1 }
 0xc70   :  { %v1819_v48 = vadd.f32 %v2044_v7, %v1401_v24 }
 0xc71   :  { %v1809_v49 = vpop.f32.mrf.mxu1 }
 0xc72   :  { %v1828_v50 = vadd.f32 %v1883_v47, %v1819_v48  ;;  %v1818_v51 = vadd.f32 %v1809_v49, %v1400_v26 }
 0xc74   :  { %1830 = vst.msk [vmem:[#allocation8 + $0x8] sm:$0xff] %vm65_vm0, %v1828_v50  ;;  %v1827_v52 = vadd.f32 %v1883_v47, %v1818_v51 }
 0xc76   :  { %1829 = vst.msk [vmem:[#allocation8] sm:$0xff] %vm65_vm0, %v1827_v52 }
 0xc77   :  { %2168 = shalt.err (!%p2165_p5)
}
 0xc78   :  { %1842 = dma.vmem_to_hbm [thread:$0]  %s1837_s17, 256, %s2411_s4, [#allocation4], %s2185_s20, %s2185_s20, %s2186_s21  }
 0xc79   :  { %2181 = dma.done.wait [#allocation4], 256  }
 0xc7a   :  { %2182 = vsyncadd [#allocation4], 4294967040 }
 0xc7b   :  { %1846 = vsyncpa [#allocation3], 1 }
 0xc7c   :  { %1847 = vsyncpa [#allocation6], 1 }
 0xc7d   :  { %1848 = vsyncpa [#allocation4], 1 }

</bundles_post_ra>
